<compile_context>
chip_gen: v5e
topology: v5e:2x2
jax: 0.10.0
libtpu: 0.0.40
codegen_flags: <defaults>
</compile_context>

<pallas_src>
import math
import functools

import jax
import jax.numpy as jnp
from jax.experimental import pallas as pl
from jax.experimental.pallas import tpu as pltpu


# ----------------------------------------------------------------------------
# Helpers
# ----------------------------------------------------------------------------
def _round_up(x, m):
    return ((x + m - 1) // m) * m


def _pick_tile(dim_pad, pref):
    """Largest multiple-of-128 divisor of dim_pad that is <= pref (min 128)."""
    t = min(pref, dim_pad)
    t = (t // 128) * 128
    while t > 128 and dim_pad % t != 0:
        t -= 128
    return max(t, 128)


# ----------------------------------------------------------------------------
# Pallas kernels
# ----------------------------------------------------------------------------
def _noisy_linear_train_kernel(x_ref, wmu_ref, wsig_ref, ein_ref, eout_ref,
                               bias_ref, o_ref, acc_ref, *, compute_dtype, tk):
    k = pl.program_id(1)

    # Factorised-noise tile: resident eps_in column (sliced per K step) times the
    # per-j eps_out row.  Cheap VPU broadcast work hidden under the weight DMA;
    # no full (K, N) epsilon array is ever read from HBM.
    k_start = pl.multiple_of(k * tk, tk)
    ein = ein_ref[pl.ds(k_start, tk), :]                      # (tk, 1) f32
    weps = (ein * eout_ref[...]).astype(compute_dtype)        # (tk, tn)

    # Weight reconstruction in the compute dtype (bf16 on v6e/v7x; f32 path exact).
    w = (wmu_ref[...].astype(compute_dtype)
         + wsig_ref[...].astype(compute_dtype) * weps)        # (tk, tn)

    partial_dot = jnp.dot(x_ref[...].astype(compute_dtype), w,
                          preferred_element_type=jnp.float32)  # (B_pad, tn) f32

    @pl.when(k == 0)
    def _init():
        acc_ref[...] = partial_dot                             # no zero + RMW pass

    @pl.when(k > 0)
    def _accumulate():
        acc_ref[...] += partial_dot

    @pl.when(k == pl.num_programs(1) - 1)
    def _finalize():
        o_ref[...] = (acc_ref[...] + bias_ref[...]).astype(o_ref.dtype)


def _noisy_linear_eval_kernel(x_ref, wmu_ref, bias_ref, o_ref, acc_ref,
                              *, compute_dtype):
    k = pl.program_id(1)

    partial_dot = jnp.dot(x_ref[...].astype(compute_dtype),
                          wmu_ref[...].astype(compute_dtype),
                          preferred_element_type=jnp.float32)

    @pl.when(k == 0)
    def _init():
        acc_ref[...] = partial_dot

    @pl.when(k > 0)
    def _accumulate():
        acc_ref[...] += partial_dot

    @pl.when(k == pl.num_programs(1) - 1)
    def _finalize():
        o_ref[...] = (acc_ref[...] + bias_ref[...]).astype(o_ref.dtype)


# ----------------------------------------------------------------------------
# Wrapper
# ----------------------------------------------------------------------------
@functools.partial(jax.jit, static_argnames=("out_features", "training", "compute_dtype"))
def noisy_linear(x, params, out_features, training=True, compute_dtype=jnp.bfloat16):
    """NoisyLinear forward.

    x: (batch, in_features) float32.
    params: dict from init_noisy_linear (pre-transposed (K, N), padded, bf16 weights).
    out_features: true (unpadded) output width; output is (batch, out_features) f32.
    """
    B, K = x.shape
    K_pad, N_pad = params["weight_mu"].shape              # stored as (K_pad, N_pad)
    assert K <= K_pad

    # bf16 packs 16 rows per sublane-packed vreg; keep 8 for the f32 verify path.
    sublane = 16 if compute_dtype == jnp.bfloat16 else 8
    B_pad = _round_up(max(B, sublane), sublane)

    # Big tiles (still only a few MiB double-buffered with bf16 weights).  Cap tn so
    # the parallel N axis has >=2 tiles whenever possible (v7x has 2 TensorCores).
    tk = _pick_tile(K_pad, 1024)
    tn_pref = 512
    if N_pad >= 256:
        tn_pref = min(tn_pref, N_pad // 2)
    tn = _pick_tile(N_pad, tn_pref)
    grid = (N_pad // tn, K_pad // tk)                      # reduction (K) axis last

    xp = x
    if (B_pad, K_pad) != (B, K):
        xp = jnp.pad(x, ((0, B_pad - B), (0, K_pad - K)))
    xp = xp.astype(compute_dtype)                          # halve x bytes on bf16 path

    out_shape = jax.ShapeDtypeStruct((B_pad, N_pad), jnp.float32)

    x_spec    = pl.BlockSpec((B_pad, tk), lambda j, k: (0, k))
    w_spec    = pl.BlockSpec((tk, tn),    lambda j, k: (k, j))
    ein_spec  = pl.BlockSpec((K_pad, 1),  lambda j, k: (0, 0))   # VMEM-resident column
    row_spec  = pl.BlockSpec((1, tn),     lambda j, k: (0, j))
    out_spec  = pl.BlockSpec((B_pad, tn), lambda j, k: (0, j))

    compiler_params = pltpu.CompilerParams(
        dimension_semantics=("parallel", "arbitrary"),     # N tiles shard across TCs
        vmem_limit_bytes=32 * 1024 * 1024)                 # v5e scoped default is 16MiB

    flops = 2 * B_pad * K_pad * N_pad
    w_bytes = params["weight_mu"].dtype.itemsize
    x_bytes = xp.dtype.itemsize

    if training:
        # Combine the bias once outside the grid (identical math, one row input).
        bias_row = params["bias_mu"] + params["bias_sigma"] * params["bias_epsilon"]
        bytes_accessed = (2 * K_pad * N_pad * w_bytes
                          + B_pad * K_pad * x_bytes
                          + B_pad * N_pad * 4
                          + K_pad * 4 + 2 * N_pad * 4)
        kernel = functools.partial(_noisy_linear_train_kernel,
                                   compute_dtype=compute_dtype, tk=tk)
        y_pad = pl.pallas_call(
            kernel,
            out_shape=out_shape,
            grid_spec=pltpu.PrefetchScalarGridSpec(
                num_scalar_prefetch=0,
                grid=grid,
                in_specs=[x_spec, w_spec, w_spec, ein_spec, row_spec, row_spec],
                out_specs=out_spec,
                scratch_shapes=[pltpu.VMEM((B_pad, tn), jnp.float32)]),
            compiler_params=compiler_params,
            cost_estimate=pl.CostEstimate(flops=flops, transcendentals=0,
                                          bytes_accessed=bytes_accessed),
        )(xp, params["weight_mu"], params["weight_sigma"],
          params["eps_in"], params["eps_out"], bias_row)
    else:
        bytes_accessed = (K_pad * N_pad * w_bytes
                          + B_pad * K_pad * x_bytes
                          + B_pad * N_pad * 4 + N_pad * 4)
        kernel = functools.partial(_noisy_linear_eval_kernel,
                                   compute_dtype=compute_dtype)
        y_pad = pl.pallas_call(
            kernel,
            out_shape=out_shape,
            grid_spec=pltpu.PrefetchScalarGridSpec(
                num_scalar_prefetch=0,
                grid=grid,
                in_specs=[x_spec, w_spec, row_spec],
                out_specs=out_spec,
                scratch_shapes=[pltpu.VMEM((B_pad, tn), jnp.float32)]),
            compiler_params=compiler_params,
            cost_estimate=pl.CostEstimate(flops=flops, transcendentals=0,
                                          bytes_accessed=bytes_accessed),
        )(xp, params["weight_mu"], params["bias_mu"])

    return y_pad[:B, :out_features]


# ----------------------------------------------------------------------------
# Deterministic parameter / noise initialization (mirrors the PyTorch module).
# Weights are stored transposed to (in_features, out_features), zero-padded to
# multiples of 128, and cast once to bf16 (param_dtype).  Noise stays factorised
# (eps_in column, eps_out row) in f32.
# ----------------------------------------------------------------------------
def _scale_noise(key, size):
    x = jax.random.normal(key, (size,), dtype=jnp.float32)
    return jnp.sign(x) * jnp.sqrt(jnp.abs(x))


def init_noisy_linear(key, in_features, out_features, std_init=0.4,
                      param_dtype=jnp.bfloat16):
    k_wmu, k_bmu, k_eps_in, k_eps_out, k_eps_b = jax.random.split(key, 5)

    K_pad = _round_up(in_features, 128)
    N_pad = _round_up(out_features, 128)

    mu_range = 1.0 / math.sqrt(in_features)

    weight_mu = jax.random.uniform(
        k_wmu, (in_features, out_features), jnp.float32,
        minval=-mu_range, maxval=mu_range)
    weight_sigma = jnp.full((in_features, out_features),
                            std_init / math.sqrt(in_features), jnp.float32)

    bias_mu = jax.random.uniform(
        k_bmu, (out_features,), jnp.float32, minval=-mu_range, maxval=mu_range)
    bias_sigma = jnp.full((out_features,),
                          std_init / math.sqrt(out_features), jnp.float32)

    # reset_noise(): factorised Gaussian noise kept as vectors (no outer product).
    eps_in = _scale_noise(k_eps_in, in_features)
    eps_out = _scale_noise(k_eps_out, out_features)
    bias_eps = _scale_noise(k_eps_b, out_features)

    def pad2(a, r, c):
        return jnp.pad(a, ((0, r - a.shape[0]), (0, c - a.shape[1])))

    return {
        "weight_mu":    pad2(weight_mu, K_pad, N_pad).astype(param_dtype),
        "weight_sigma": pad2(weight_sigma, K_pad, N_pad).astype(param_dtype),
        "eps_in":       pad2(eps_in.reshape(in_features, 1), K_pad, 1),
        "eps_out":      pad2(eps_out.reshape(1, out_features), 1, N_pad),
        "bias_mu":      pad2(bias_mu.reshape(1, out_features), 1, N_pad),
        "bias_sigma":   pad2(bias_sigma.reshape(1, out_features), 1, N_pad),
        "bias_epsilon": pad2(bias_eps.reshape(1, out_features), 1, N_pad),
    }


# ----------------------------------------------------------------------------
# Pure-JAX reference (uses the same stored parameters, upcast to f32)
# ----------------------------------------------------------------------------
def noisy_linear_ref(x, params, out_features, training=True):
    K_pad, _ = params["weight_mu"].shape
    B, K = x.shape
    xp = jnp.pad(x, ((0, 0), (0, K_pad - K)))
    wmu = params["weight_mu"].astype(jnp.float32)
    if training:
        wsig = params["weight_sigma"].astype(jnp.float32)
        weps = params["eps_in"] * params["eps_out"]
        w = wmu + wsig * weps
        b = params["bias_mu"] + params["bias_sigma"] * params["bias_epsilon"]
    else:
        w = wmu
        b = params["bias_mu"]
    return (xp @ w + b)[:, :out_features]


if __name__ == "__main__":
    key = jax.random.PRNGKey(0)
    k_params, k_x = jax.random.split(key)

    # Small, RL-like shapes (hidden=32, action-count-sized output, odd batch
    # to exercise the padding / lane-dense output path).
    batch, in_features, out_features = 5, 32, 18
    params = init_noisy_linear(k_params, in_features, out_features, std_init=0.4)
    x = jax.random.normal(k_x, (batch, in_features), dtype=jnp.float32)

    y_ref = noisy_linear_ref(x, params, out_features, training=True)

    # f32 compute path (bf16-stored weights upcast in-kernel) -> tight check.
    y32 = jax.block_until_ready(
        noisy_linear(x, params, out_features, training=True,
                     compute_dtype=jnp.float32))
    assert y32.shape == (batch, out_features)
    assert jnp.allclose(y32, y_ref, atol=1e-4, rtol=1e-4), "f32 mismatch vs reference"

    # Default bf16 compute path (v6e/v7x fast path) -> loose check.
    ybf = jax.block_until_ready(noisy_linear(x, params, out_features, training=True))
    assert jnp.allclose(ybf, y_ref, atol=5e-2, rtol=5e-2), "bf16 mismatch vs reference"

    # Eval-mode path (weight_mu / bias_mu only).
    ye = jax.block_until_ready(
        noisy_linear(x, params, out_features, training=False,
                     compute_dtype=jnp.float32))
    ye_ref = noisy_linear_ref(x, params, out_features, training=False)
    assert jnp.allclose(ye, ye_ref, atol=1e-4, rtol=1e-4), "eval mismatch vs reference"

    print("KERNEL_OK")
</pallas_src>

<mosaic_0001>
module attributes {stable_mosaic.version = 11 : i64} {
  func.func @_noisy_linear_train_kernel(%arg0: i32, %arg1: i32, %arg2: memref<8x128xf32, #tpu.memory_space<vmem>>, %arg3: memref<128x128xbf16, #tpu.memory_space<vmem>>, %arg4: memref<128x128xbf16, #tpu.memory_space<vmem>>, %arg5: memref<128x1xf32, #tpu.memory_space<vmem>>, %arg6: memref<1x128xf32, #tpu.memory_space<vmem>>, %arg7: memref<1x128xf32, #tpu.memory_space<vmem>>, %arg8: memref<8x128xf32, #tpu.memory_space<vmem>>, %arg9: memref<8x128xf32, #tpu.memory_space<vmem>>) attributes {dimension_semantics = [#tpu.dimension_semantics<parallel>, #tpu.dimension_semantics<arbitrary>], iteration_bounds = array<i64: 1, 1>, scalar_prefetch = 0 : i64, scratch_operands = 1 : i64, tpu.core_type = #tpu.core_type<tc>, window_params = [{transform_indices = @transform_0, window_bounds = array<i64: 8, 128>}, {transform_indices = @transform_1, window_bounds = array<i64: 128, 128>}, {transform_indices = @transform_2, window_bounds = array<i64: 128, 128>}, {pipeline_mode = #tpu.pipeline_mode<synchronous>, transform_indices = @transform_3, window_bounds = array<i64: 128, 1>}, {transform_indices = @transform_4, window_bounds = array<i64: 1, 128>}, {transform_indices = @transform_5, window_bounds = array<i64: 1, 128>}, {transform_indices = @transform_6, window_bounds = array<i64: 8, 128>}]} {
    %c128_i32 = arith.constant 128 : i32
    %0 = arith.muli %arg1, %c128_i32 : i32
    %1 = tpu.assume_multiple %0, 128 : i32
    %2 = arith.index_cast %1 : i32 to index
    %c0 = arith.constant 0 : index
    %3 = vector.load %arg5[%2, %c0] : memref<128x1xf32, #tpu.memory_space<vmem>>, vector<128x1xf32>
    %c0_0 = arith.constant 0 : index
    %c0_1 = arith.constant 0 : index
    %4 = vector.load %arg6[%c0_0, %c0_1] : memref<1x128xf32, #tpu.memory_space<vmem>>, vector<1x128xf32>
    %5 = vector.broadcast %3 : vector<128x1xf32> to vector<128x128xf32>
    %6 = vector.broadcast %4 : vector<1x128xf32> to vector<128x128xf32>
    %7 = arith.mulf %5, %6 : vector<128x128xf32>
    %c0_2 = arith.constant 0 : index
    %c0_3 = arith.constant 0 : index
    %8 = vector.load %arg3[%c0_2, %c0_3] : memref<128x128xbf16, #tpu.memory_space<vmem>>, vector<128x128xbf16>
    %9 = arith.extf %8 : vector<128x128xbf16> to vector<128x128xf32>
    %c0_4 = arith.constant 0 : index
    %c0_5 = arith.constant 0 : index
    %10 = vector.load %arg4[%c0_4, %c0_5] : memref<128x128xbf16, #tpu.memory_space<vmem>>, vector<128x128xbf16>
    %11 = arith.extf %10 : vector<128x128xbf16> to vector<128x128xf32>
    %12 = arith.mulf %11, %7 : vector<128x128xf32>
    %13 = arith.addf %9, %12 : vector<128x128xf32>
    %c0_6 = arith.constant 0 : index
    %c0_7 = arith.constant 0 : index
    %14 = vector.load %arg2[%c0_6, %c0_7] : memref<8x128xf32, #tpu.memory_space<vmem>>, vector<8x128xf32>
    %cst = arith.constant dense<0.000000e+00> : vector<8x128xf32>
    %15 = tpu.matmul %14, %13, %cst {dimension_numbers = #tpu.dot_dimension_numbers<[1], [0], [0], [1], [0, 0, 1, 1], [], []>} : vector<8x128xf32>, vector<128x128xf32>, vector<8x128xf32> -> vector<8x128xf32>
    %c0_i32 = arith.constant 0 : i32
    %16 = arith.cmpi eq, %arg1, %c0_i32 : i32
    %17 = arith.extui %16 : i1 to i32
    %c0_i32_8 = arith.constant 0 : i32
    %18 = arith.cmpi ne, %17, %c0_i32_8 : i32
    scf.if %18 {
      %c0_13 = arith.constant 0 : index
      %c0_14 = arith.constant 0 : index
      %25 = vector.load %arg9[%c0_13, %c0_14] : memref<8x128xf32, #tpu.memory_space<vmem>>, vector<8x128xf32>
      tpu.vector_store %arg9[%c0_13, %c0_14], %15 {strides = array<i32>} : memref<8x128xf32, #tpu.memory_space<vmem>>, vector<8x128xf32>,
    } else {
    }
    %c0_i32_9 = arith.constant 0 : i32
    %19 = arith.cmpi sgt, %arg1, %c0_i32_9 : i32
    %20 = arith.extui %19 : i1 to i32
    %c0_i32_10 = arith.constant 0 : i32
    %21 = arith.cmpi ne, %20, %c0_i32_10 : i32
    scf.if %21 {
      %c0_13 = arith.constant 0 : index
      %c0_14 = arith.constant 0 : index
      %25 = vector.load %arg9[%c0_13, %c0_14] : memref<8x128xf32, #tpu.memory_space<vmem>>, vector<8x128xf32>
      %26 = arith.addf %25, %15 : vector<8x128xf32>
      %c0_15 = arith.constant 0 : index
      %c0_16 = arith.constant 0 : index
      %27 = vector.load %arg9[%c0_15, %c0_16] : memref<8x128xf32, #tpu.memory_space<vmem>>, vector<8x128xf32>
      tpu.vector_store %arg9[%c0_15, %c0_16], %26 {strides = array<i32>} : memref<8x128xf32, #tpu.memory_space<vmem>>, vector<8x128xf32>,
    } else {
    }
    %c0_i32_11 = arith.constant 0 : i32
    %22 = arith.cmpi eq, %arg1, %c0_i32_11 : i32
    %23 = arith.extui %22 : i1 to i32
    %c0_i32_12 = arith.constant 0 : i32
    %24 = arith.cmpi ne, %23, %c0_i32_12 : i32
    scf.if %24 {
      %c0_13 = arith.constant 0 : index
      %c0_14 = arith.constant 0 : index
      %25 = vector.load %arg9[%c0_13, %c0_14] : memref<8x128xf32, #tpu.memory_space<vmem>>, vector<8x128xf32>
      %c0_15 = arith.constant 0 : index
      %c0_16 = arith.constant 0 : index
      %26 = vector.load %arg7[%c0_15, %c0_16] : memref<1x128xf32, #tpu.memory_space<vmem>>, vector<1x128xf32>
      %27 = vector.broadcast %26 : vector<1x128xf32> to vector<8x128xf32>
      %28 = arith.addf %25, %27 : vector<8x128xf32>
      %c0_17 = arith.constant 0 : index
      %c0_18 = arith.constant 0 : index
      %29 = vector.load %arg8[%c0_17, %c0_18] : memref<8x128xf32, #tpu.memory_space<vmem>>, vector<8x128xf32>
      tpu.vector_store %arg8[%c0_17, %c0_18], %28 {strides = array<i32>} : memref<8x128xf32, #tpu.memory_space<vmem>>, vector<8x128xf32>,
    } else {
    }
    return
  }
  func.func @transform_0(%arg0: i32, %arg1: i32) -> (i32, i32) {
    %c0_i32 = arith.constant 0 : i32
    %c0_i32_0 = arith.constant 0 : i32
    return %c0_i32, %arg1 : i32, i32
  }
  func.func @transform_1(%arg0: i32, %arg1: i32) -> (i32, i32) {
    %c0_i32 = arith.constant 0 : i32
    return %arg1, %arg0 : i32, i32
  }
  func.func @transform_2(%arg0: i32, %arg1: i32) -> (i32, i32) {
    %c0_i32 = arith.constant 0 : i32
    return %arg1, %arg0 : i32, i32
  }
  func.func @transform_3(%arg0: i32, %arg1: i32) -> (i32, i32) {
    %c0_i32 = arith.constant 0 : i32
    %c0_i32_0 = arith.constant 0 : i32
    %c0_i32_1 = arith.constant 0 : i32
    return %c0_i32, %c0_i32_0 : i32, i32
  }
  func.func @transform_4(%arg0: i32, %arg1: i32) -> (i32, i32) {
    %c0_i32 = arith.constant 0 : i32
    %c0_i32_0 = arith.constant 0 : i32
    return %c0_i32, %arg0 : i32, i32
  }
  func.func @transform_5(%arg0: i32, %arg1: i32) -> (i32, i32) {
    %c0_i32 = arith.constant 0 : i32
    %c0_i32_0 = arith.constant 0 : i32
    return %c0_i32, %arg0 : i32, i32
  }
  func.func @transform_6(%arg0: i32, %arg1: i32) -> (i32, i32) {
    %c0_i32 = arith.constant 0 : i32
    %c0_i32_0 = arith.constant 0 : i32
    return %c0_i32, %arg0 : i32, i32
  }
}

</mosaic_0001>

<bundles_post_ra>
// kernel: noisy_linear.1
= control target key start
LH: loop header
LB: loop body
LE: loop exit
PB: predicated region body
PF: predicated region fallthrough
CT: control target
= control target key end

     0   :  { %v408_v3 = vmov 0   ;;  %s571_s0 = inlined_call_operand.vmem [shape: f32[8,128], index: 0, kind: input, shape index: {}]   ;;  %s572_s1 = inlined_call_operand.vmem [shape: bf16[128,128], index: 1, kind: input, shape index: {}]   ;;  %s573_s2 = inlined_call_operand.vmem [shape: bf16[128,128], index: 2, kind: input, shape index: {}]   ;;  %s574_s3 = inlined_call_operand.vmem [shape: f32[128,1], index: 3, kind: input, shape index: {}]   ;;  %s575_s4 = inlined_call_operand.vmem [shape: f32[1,128], index: 4, kind: input, shape index: {}]   ;;  %s576_s5 = inlined_call_operand.vmem [shape: f32[1,128], index: 5, kind: input, shape index: {}]   ;;  %s577_s6 = inlined_call_operand.hbm [shape: f32[8,128], index: 6, kind: output, shape index: {}]  }
   0x1   :  { %v41_v0 = vld [vmem:[%s574_s3 + $0x78] sm:$0xff]  ;;  %v39_v1 = vld [vmem:[%s574_s3 + $0x68] sm:$0xff]  ;;  %379 = vset.pattern.permute.xlu2 %v408_v3  ;;  %378 = vset.pattern.permute.xlu1 %v408_v3 }
   0x2   :  { %v37_v2 = vld [vmem:[%s574_s3 + $0x58] sm:$0xff]  ;;  %377 = vset.pattern.permute.xlu0 %v408_v3  ;;  %110 = vperm.xlu1 %378, %v39_v1  }
   0x3   :  { %120 = vperm.xlu0 %377, %v41_v0   ;;  %100 = vperm.xlu2 %379, %v37_v2  }
   0x4   :  { %11 = vsyncpa [#allocation4], 0  ;;  %v38_v4 = vld [vmem:[%s574_s3 + $0x60] sm:$0xff]  ;;  %v40_v5 = vld [vmem:[%s574_s3 + $0x70] sm:$0xff]  ;;  %s409_s13 = smov [#allocation3]   ;;  %s288_s17 = sshll.u32 %s577_s6, 4  ;;  %s289_s17 = int_to_ptr.hbm [resolvable:$true] %s288_s17 }
   0x5   :  { %v36_v6 = vld [vmem:[%s574_s3 + $0x50] sm:$0xff]  ;;  %v34_v7 = vld [vmem:[%s574_s3 + $0x40] sm:$0xff]  ;;  %v35_v8 = vld [vmem:[%s574_s3 + $0x48] sm:$0xff]  ;;  %s286_s14 = sshll.u32 %s409_s13, 4  ;;  %s287_s14 = int_to_ptr.vmem [resolvable:$true] %s286_s14 }
   0x6   :  { %v33_v9 = vld [vmem:[%s574_s3 + $0x38] sm:$0xff]  ;;  %v31_v10 = vld [vmem:[%s574_s3 + $0x28] sm:$0xff]  ;;  %v32_v11 = vld [vmem:[%s574_s3 + $0x30] sm:$0xff] }
   0x7   :  { %v30_v12 = vld [vmem:[%s574_s3 + $0x20] sm:$0xff]  ;;  %v28_v13 = vld [vmem:[%s574_s3 + $0x10] sm:$0xff]  ;;  %v29_v14 = vld [vmem:[%s574_s3 + $0x18] sm:$0xff] }
   0x8   :  { %v27_v15 = vld [vmem:[%s574_s3 + $0x8] sm:$0xff]  ;;  %v26_v16 = vld [vmem:[%s574_s3] sm:$0xff]  ;;  %v374_v18 = vld [vmem:[%s573_s2 + $0x38] sm:$0xff]  }
   0x9   :  { %v499_v19 = vld [vmem:[%s575_s4] ss:$0 sm:$0xff]  ;;  %v367_v20 = vld [vmem:[%s572_s1 + $0x38] sm:$0xff]   ;;  %v360_v22 = vunpack.c.h.bf16 %v374_v18  ;;  %v373_v28 = vld [vmem:[%s573_s2 + $0x30] sm:$0xff]   ;;  %v359_v33 = vunpack.c.l.bf16 %v374_v18 }
   0xa   :  { %105 = vperm.xlu1 %378, %v38_v4   ;;  %v328_v26 = vunpack.c.h.bf16 %v367_v20  ;;  %v372_v30 = vld [vmem:[%s573_s2 + $0x28] sm:$0xff]   ;;  %v356_v31 = vunpack.c.h.bf16 %v373_v28  ;;  %v366_v36 = vld [vmem:[%s572_s1 + $0x30] sm:$0xff]   ;;  %v355_v38 = vunpack.c.l.bf16 %v373_v28  ;;  %v327_v40 = vunpack.c.l.bf16 %v367_v20  ;;  %v371_v48 = vld [vmem:[%s573_s2 + $0x20] sm:$0xff]  }
   0xb   :  { %115 = vperm.xlu0 %377, %v40_v5   ;;  %95 = vperm.xlu2 %379, %v36_v6   ;;  %v352_v41 = vunpack.c.h.bf16 %v372_v30  ;;  %v324_v46 = vunpack.c.h.bf16 %v366_v36  ;;  %v351_v47 = vunpack.c.l.bf16 %v372_v30  ;;  %v365_v49 = vld [vmem:[%s572_s1 + $0x28] sm:$0xff]   ;;  %v323_v53 = vunpack.c.l.bf16 %v366_v36  ;;  %v370_v55 = vld [vmem:[%s573_s2 + $0x18] sm:$0xff]   ;;  %v364_v63 = vld [vmem:[%s572_s1 + $0x20] sm:$0xff]  }
   0xc   :  { %v348_v56 = vunpack.c.h.bf16 %v371_v48  ;;  %v320_v59 = vunpack.c.h.bf16 %v365_v49  ;;  %v347_v61 = vunpack.c.l.bf16 %v371_v48  ;;  %v319_v62 = vunpack.c.l.bf16 %v365_v49  ;;  %v330_v36 = vld [vmem:[%s573_s2] sm:$0xff]  }
   0xd   :  { %v344_v4 = vunpack.c.h.bf16 %v370_v55 }
  0x12   :  { %85 = vperm.xlu1 %378, %v34_v7  }
  0x13   :  { %90 = vperm.xlu0 %377, %v35_v8   ;;  %80 = vperm.xlu2 %379, %v33_v9   ;;  %v316_v8 = vunpack.c.h.bf16 %v364_v63  ;;  %v363_v9 = vld [vmem:[%s572_s1 + $0x18] sm:$0xff]  }
  0x14   :  { %v311_v28 = vunpack.c.l.bf16 %v363_v9 }
  0x1a   :  { %70 = vperm.xlu1 %378, %v31_v10  }
  0x1b   :  { %75 = vperm.xlu0 %377, %v32_v11   ;;  %65 = vperm.xlu2 %379, %v30_v12   ;;  %v369_v11 = vld [vmem:[%s573_s2 + $0x10] sm:$0xff]  }
  0x1c   :  { %v340_v18 = vunpack.c.h.bf16 %v369_v11 }
  0x22   :  { %55 = vperm.xlu1 %378, %v28_v13  }
  0x23   :  { %60 = vperm.xlu0 %377, %v29_v14   ;;  %50 = vperm.xlu2 %379, %v27_v15   ;;  %v315_v14 = vunpack.c.l.bf16 %v364_v63  ;;  %v312_v15 = vunpack.c.h.bf16 %v363_v9 }
  0x2b   :  { %45 = vperm.xlu0 %377, %v26_v16  }
  0x5d   :  { %v101_v17 = vpop.permute.xlu2 %100 }
  0x5e   :  { %v137_v43 = vmul.f32 %v499_v19, %v101_v17  ;;  %v343_v17 = vunpack.c.l.bf16 %v370_v55 }
  0x60   :  { %v217_v54 = vmul.f32 %v352_v41, %v137_v43 }
  0x62   :  { %v233_v7 = vadd.f32 %v320_v59, %v217_v54  ;;  %v331_v59 = vunpack.c.l.bf16 %v330_v36 }
  0x65   :  { %v96_v23 = vpop.permute.xlu2 %95 }
  0x66   :  { %v136_v50 = vmul.f32 %v499_v19, %v96_v23 }
  0x68   :  { %v216_v0 = vmul.f32 %v351_v47, %v136_v50 }
  0x6a   :  { %v232_v13 = vadd.f32 %v319_v62, %v216_v0 }
  0x6d   :  { %v81_v42 = vpop.permute.xlu2 %80 }
  0x6e   :  { %v133_v5 = vmul.f32 %v499_v19, %v81_v42 }
  0x70   :  { %v213_v16 = vmul.f32 %v344_v4, %v133_v5  ;;  %v381_v4 = vld [vmem:[%s576_s5] ss:$0 sm:$0xff] }
  0x74   :  { %v111_v21 = vpop.permute.xlu1 %110 }
  0x75   :  { %v121_v24 = vpop.permute.xlu0 %120  ;;  %v139_v32 = vmul.f32 %v499_v19, %v111_v21  ;;  %v66_v10 = vpop.permute.xlu2 %65 }
  0x76   :  { %v141_v25 = vmul.f32 %v499_v19, %v121_v24 }
  0x77   :  { %v219_v44 = vmul.f32 %v356_v31, %v139_v32  ;;  %v229_v32 = vadd.f32 %v312_v15, %v213_v16 }
  0x78   :  { %v221_v27 = vmul.f32 %v360_v22, %v141_v25  ;;  %v339_v22 = vunpack.c.l.bf16 %v369_v11  ;;  %v130_v25 = vmul.f32 %v499_v19, %v66_v10 }
  0x79   :  { %v235_v58 = vadd.f32 %v324_v46, %v219_v44 }
  0x7a   :  { %v237_v29 = vadd.f32 %v328_v26, %v221_v27 }
  0x7c   :  { %239 = vmatpush.msra.mxu0 %v237_v29  ;;  %v106_v34 = vpop.permute.xlu1 %105  ;;  %v362_v29 = vld [vmem:[%s572_s1 + $0x10] sm:$0xff]  }
  0x7d   :  { %v116_v35 = vpop.permute.xlu0 %115  ;;  %v138_v39 = vmul.f32 %v499_v19, %v106_v34  ;;  %v368_v34 = vld [vmem:[%s573_s2 + $0x8] sm:$0xff]  }
  0x7e   :  { %v140_v37 = vmul.f32 %v499_v19, %v116_v35  ;;  %v210_v35 = vmul.f32 %v339_v22, %v130_v25  ;;  %v336_v41 = vunpack.c.h.bf16 %v368_v34  ;;  %v335_v42 = vunpack.c.l.bf16 %v368_v34 }
  0x7f   :  { %v218_v51 = vmul.f32 %v355_v38, %v138_v39  ;;  %v307_v38 = vunpack.c.l.bf16 %v362_v29  ;;  %v51_v39 = vpop.permute.xlu2 %50 }
  0x80   :  { %v220_v45 = vmul.f32 %v359_v33, %v140_v37  ;;  %v308_v33 = vunpack.c.h.bf16 %v362_v29  ;;  %v127_v48 = vmul.f32 %v499_v19, %v51_v39 }
  0x81   :  { %v234_v3 = vadd.f32 %v323_v53, %v218_v51  ;;  %v226_v50 = vadd.f32 %v307_v38, %v210_v35 }
  0x82   :  { %v236_v52 = vadd.f32 %v327_v40, %v220_v45  ;;  %v361_v40 = vld [vmem:[%s572_s1 + $0x8] sm:$0xff]   ;;  %v332_v45 = vunpack.c.h.bf16 %v330_v36 }
  0x83   :  { %v304_v51 = vunpack.c.h.bf16 %v361_v40  ;;  %v303_v55 = vunpack.c.l.bf16 %v361_v40 }
  0x84   :  { %240 = vmatpush.msra.mxu0 %v236_v52  ;;  %v86_v57 = vpop.permute.xlu1 %85  ;;  %v298_v52 = vld [vmem:[%s572_s1] sm:$0xff]  }
  0x85   :  { %v91_v60 = vpop.permute.xlu0 %90  ;;  %v134_v2 = vmul.f32 %v499_v19, %v86_v57  ;;  %v299_v0 = vunpack.c.l.bf16 %v298_v52 }
  0x86   :  { %v135_v1 = vmul.f32 %v499_v19, %v91_v60  ;;  %241 = vmatpush.msra.mxu0 %v235_v58  ;;  %v300_v58 = vunpack.c.h.bf16 %v298_v52 }
  0x87   :  { %v214_v12 = vmul.f32 %v347_v61, %v134_v2 }
  0x88   :  { %v215_v6 = vmul.f32 %v348_v56, %v135_v1  ;;  %242 = vmatpush.msra.mxu0 %v234_v3  ;;  %v207_v56 = vmul.f32 %v332_v45, %v127_v48  ;;  %v238_v3 = vld [vmem:[%s571_s0] sm:$0xff] }
  0x89   :  { %v230_v27 = vadd.f32 %v315_v14, %v214_v12 }
  0x8a   :  { %243 = vmatpush.msra.mxu0 %v233_v7  ;;  %v231_v21 = vadd.f32 %v316_v8, %v215_v6  ;;  %v223_v63 = vadd.f32 %v300_v58, %v207_v56 }
  0x8c   :  { %244 = vmatpush.msra.mxu0 %v232_v13  ;;  %v71_v20 = vpop.permute.xlu1 %70 }
  0x8d   :  { %v76_v23 = vpop.permute.xlu0 %75  ;;  %v131_v24 = vmul.f32 %v499_v19, %v71_v20 }
  0x8e   :  { %v132_v26 = vmul.f32 %v499_v19, %v76_v23  ;;  %245 = vmatpush.msra.mxu0 %v231_v21 }
  0x8f   :  { %v211_v31 = vmul.f32 %v340_v18, %v131_v24 }
  0x90   :  { %v212_v30 = vmul.f32 %v343_v17, %v132_v26  ;;  %246 = vmatpush.msra.mxu0 %v230_v27 }
  0x91   :  { %v227_v44 = vadd.f32 %v308_v33, %v211_v31 }
  0x92   :  { %247 = vmatpush.msra.mxu0 %v229_v32  ;;  %v228_v37 = vadd.f32 %v311_v28, %v212_v30 }
  0x94   :  { %248 = vmatpush.msra.mxu0 %v228_v37  ;;  %v56_v43 = vpop.permute.xlu1 %55 }
  0x95   :  { %v61_v46 = vpop.permute.xlu0 %60  ;;  %v128_v47 = vmul.f32 %v499_v19, %v56_v43 }
  0x96   :  { %v129_v49 = vmul.f32 %v499_v19, %v61_v46  ;;  %249 = vmatpush.msra.mxu0 %v227_v44 }
  0x97   :  { %v208_v54 = vmul.f32 %v335_v42, %v128_v47 }
  0x98   :  { %v209_v53 = vmul.f32 %v336_v41, %v129_v49  ;;  %250 = vmatpush.msra.mxu0 %v226_v50 }
  0x99   :  { %v224_v60 = vadd.f32 %v303_v55, %v208_v54 }
  0x9a   :  { %v225_v57 = vadd.f32 %v304_v51, %v209_v53 }
  0x9c   :  { %251 = vmatpush.msra.mxu0 %v225_v57 }
  0x9d   :  { %v46_v61 = vpop.permute.xlu0 %45 }
  0x9e   :  { %v126_v62 = vmul.f32 %v499_v19, %v46_v61  ;;  %252 = vmatpush.msra.mxu0 %v224_v60 }
  0xa0   :  { %v206_v1 = vmul.f32 %v331_v59, %v126_v62  ;;  %253 = vmatpush.msra.mxu0 %v223_v63 }
  0xa2   :  { %v222_v2 = vadd.f32 %v299_v0, %v206_v1 }
  0xa4   :  { %254 = vmatpush.msra.mxu0 %v222_v2 }
  0xa5   :  { %255 = vmatmul.f32.vlgmr.msra.gmra.mxu0 %v238_v3 }
 0x122   :  { %v256_v19 = vpop.f32.mrf.mxu0 }
 0x123   :  { %v279_v5 = vadd.f32 %v381_v4, %v256_v19 }
 0x125   :  { %280 = vst [vmem:[#allocation3] sm:$0xff] %v279_v5 }
 0x126   :  { %291 = dma.vmem_to_hbm [thread:$0]  %s287_s14, 128, %s289_s17, [#allocation4]  }
 0x127   :  { %406 = dma.done.wait [#allocation4], 128  }
 0x128   :  { %407 = vsyncadd [#allocation4], 4294967168 }
 0x129   :  { %296 = vsyncpa [#allocation4], 1 }

</bundles_post_ra>
